<compile_context>
chip_gen: v7x
topology: tpu7x:2x2x1
jax: 0.10.0
libtpu: 0.0.40
codegen_flags: <defaults>
</compile_context>

<pallas_src>
import functools

import jax
import jax.numpy as jnp
from jax.experimental import pallas as pl
from jax.experimental.pallas import tpu as pltpu


def _cdiv(a, b):
    return -(-a // b)


def _pick_row_tile(R2, W2, C, itemsize):
    """Row-pairs (tr) per grid step; merged rows per step = tr * W2."""
    C4, C2 = 4 * C, 2 * C
    # Rough VMEM bytes per merged row: double-buffered input slab, f32 LN
    # temporaries + cast-back normalized activations, double-buffered output
    # block + f32 accumulator.
    bytes_per_row = C4 * (3 * itemsize + 12) + C2 * (2 * itemsize + 4)
    budget = 16 * 1024 * 1024            # stay well under the 32 MiB VMEM limit
    max_rows = max(W2, budget // bytes_per_row)
    target_rows = min(1024, max_rows)    # ~1K rows amortizes per-step overhead
    tr_cap = max(1, min(target_rows // W2, R2))
    if R2 >= 2:                          # >= 2 grid steps so both v7x TCs work
        tr_cap = min(tr_cap, _cdiv(R2, 2))
    # Prefer an exact divisor of R2 (no ragged tail block).
    tr = 1
    for d in range(tr_cap, 0, -1):
        if R2 % d == 0:
            tr = d
            break
    if 4 * tr < tr_cap:
        tr = tr_cap                      # ragged tail; Pallas masks OOB stores
    return tr


def _patch_merge_kernel(x_ref, we_ref, wo_ref, b_ref, o_ref, *, eps):
    """Fused 2x2 merge + LayerNorm(4C) + bias-free Linear(4C -> 2C).

    x_ref:  (tr, 2, W2, 2C)  contiguous slab; hp=0 lanes = [x0|x2], hp=1 = [x1|x3]
    we_ref: (2C, N)          gamma-folded weight rows for the [x0|x2] channels
    wo_ref: (2C, N)          gamma-folded weight rows for the [x1|x3] channels
    b_ref:  (1, N)           beta @ W^T  (f32)
    o_ref:  (tr, W2, N)
    """
    tr, _, w2, c2 = x_ref.shape
    n_out = we_ref.shape[-1]
    tm = tr * w2

    xfull = x_ref[...]
    # Static slice on an outer dim (no relayout), then a free leading-dim merge.
    xe = xfull[:, 0, :, :].reshape(tm, c2).astype(jnp.float32)   # [x0 | x2]
    xo = xfull[:, 1, :, :].reshape(tm, c2).astype(jnp.float32)   # [x1 | x3]

    # One-pass LayerNorm statistics over the full 4C features (both halves).
    inv_n = 1.0 / (2 * c2)
    s = jnp.sum(xe, axis=-1, keepdims=True) + jnp.sum(xo, axis=-1, keepdims=True)
    ss = (jnp.sum(xe * xe, axis=-1, keepdims=True)
          + jnp.sum(xo * xo, axis=-1, keepdims=True))
    mean = s * inv_n
    var = jnp.maximum(ss * inv_n - mean * mean, 0.0)
    inv = jax.lax.rsqrt(var + eps)

    # Normalize in f32; cast back so the MXU runs in the native input dtype.
    xen = ((xe - mean) * inv).astype(x_ref.dtype)
    xon = ((xo - mean) * inv).astype(x_ref.dtype)

    y = jnp.dot(xen, we_ref[...], preferred_element_type=jnp.float32)
    y += jnp.dot(xon, wo_ref[...], preferred_element_type=jnp.float32)
    y += b_ref[...]
    o_ref[...] = y.reshape(tr, w2, n_out).astype(o_ref.dtype)


def patch_merging(x, gamma, beta, w_reduction, input_resolution, *, eps=1e-5):
    """Pallas implementation of SwinIR PatchMerging.forward.

    x:            (B, H*W, C)
    gamma, beta:  (4*C,)          LayerNorm params
    w_reduction:  (2*C, 4*C)      nn.Linear weight (out_features, in_features)
    returns:      (B, H*W//4, 2*C)
    """
    H, W = input_resolution
    B, L, C = x.shape
    assert L == H * W, "input feature has wrong size"
    assert H % 2 == 0 and W % 2 == 0, f"x size ({H}*{W}) are not even."

    H2, W2 = H // 2, W // 2
    C4, C2 = 4 * C, 2 * C
    R2 = B * H2                      # number of image row-pairs
    rows = R2 * W2                   # number of merged patches

    # Free (layout-preserving) view: lane axis packs the two w-parities, so the
    # hp=0 slab holds the [x0 | x2] channels and the hp=1 slab holds [x1 | x3].
    xv = x.reshape(R2, 2, W2, 2 * C)

    # Fold the LayerNorm affine into the matmul, and permute the weight rows to
    # match the in-VMEM channel order instead of re-ordering activations.
    w_t = w_reduction.T.astype(jnp.float32)                    # (4C, 2C), rows [x0;x1;x2;x3]
    w_prime = gamma.astype(jnp.float32)[:, None] * w_t
    bias = (beta.astype(jnp.float32) @ w_t).reshape(1, C2)     # (1, 2C), f32
    w_even = jnp.concatenate([w_prime[0:C], w_prime[2 * C:3 * C]], axis=0).astype(x.dtype)
    w_odd = jnp.concatenate([w_prime[C:2 * C], w_prime[3 * C:4 * C]], axis=0).astype(x.dtype)

    tr = _pick_row_tile(R2, W2, C, x.dtype.itemsize)
    grid = (_cdiv(R2, tr),)

    cost = pl.CostEstimate(
        flops=2 * rows * C4 * C2,
        transcendentals=rows,
        bytes_accessed=(x.size * x.dtype.itemsize
                        + rows * C2 * x.dtype.itemsize
                        + 2 * C2 * C2 * x.dtype.itemsize
                        + C2 * 4),
    )

    out = pl.pallas_call(
        functools.partial(_patch_merge_kernel, eps=eps),
        out_shape=jax.ShapeDtypeStruct((R2, W2, C2), x.dtype),
        grid=grid,
        in_specs=[
            pl.BlockSpec((tr, 2, W2, 2 * C), lambda i: (i, 0, 0, 0)),  # x slab
            pl.BlockSpec((C2, C2), lambda i: (0, 0)),                  # w_even (resident)
            pl.BlockSpec((C2, C2), lambda i: (0, 0)),                  # w_odd  (resident)
            pl.BlockSpec((1, C2), lambda i: (0, 0)),                   # bias   (resident)
        ],
        out_specs=pl.BlockSpec((tr, W2, C2), lambda i: (i, 0, 0)),
        compiler_params=pltpu.CompilerParams(
            dimension_semantics=("parallel",),
            vmem_limit_bytes=32 * 1024 * 1024,
        ),
        cost_estimate=cost,
    )(xv, w_even, w_odd, bias)

    # Free reshape: (B*H/2, W/2, 2C) -> (B, H*W/4, 2C).
    return out.reshape(B, H2 * W2, C2)


def _reference(x, gamma, beta, w_reduction, input_resolution, eps=1e-5):
    """Pure-JAX reference matching the PyTorch forward exactly."""
    H, W = input_resolution
    B, L, C = x.shape
    xv = x.reshape(B, H, W, C)
    x0 = xv[:, 0::2, 0::2, :]
    x1 = xv[:, 1::2, 0::2, :]
    x2 = xv[:, 0::2, 1::2, :]
    x3 = xv[:, 1::2, 1::2, :]
    xm = jnp.concatenate([x0, x1, x2, x3], axis=-1).reshape(B, -1, 4 * C)
    mean = jnp.mean(xm, axis=-1, keepdims=True)
    var = jnp.mean((xm - mean) ** 2, axis=-1, keepdims=True)
    xn = (xm - mean) / jnp.sqrt(var + eps) * gamma + beta
    return xn @ w_reduction.T


if __name__ == "__main__":
    # Small shapes consistent with the module: dim (C) = 4, resolution 16x16.
    B, H, W, C = 2, 16, 16, 4
    key = jax.random.PRNGKey(0)
    kx, kw, kg, kb = jax.random.split(key, 4)

    x = jax.random.normal(kx, (B, H * W, C), dtype=jnp.float32)
    # Deterministic synthetic parameters (shapes per nn.Linear / nn.LayerNorm).
    w_reduction = jax.random.normal(kw, (2 * C, 4 * C), dtype=jnp.float32) * 0.1
    gamma = 1.0 + 0.05 * jax.random.normal(kg, (4 * C,), dtype=jnp.float32)
    beta = 0.05 * jax.random.normal(kb, (4 * C,), dtype=jnp.float32)

    fn = jax.jit(patch_merging, static_argnums=(4,))
    out = jax.block_until_ready(fn(x, gamma, beta, w_reduction, (H, W)))

    ref = _reference(x, gamma, beta, w_reduction, (H, W))
    assert out.shape == (B, (H // 2) * (W // 2), 2 * C), out.shape
    assert jnp.allclose(out, ref, atol=1e-4, rtol=1e-4), (
        float(jnp.max(jnp.abs(out - ref))))

    print("KERNEL_OK")
</pallas_src>

<mosaic_0001>
module attributes {stable_mosaic.version = 11 : i64} {
  func.func @_patch_merge_kernel(%arg0: i32, %arg1: memref<8x2x8x8xf32, #tpu.memory_space<vmem>>, %arg2: memref<8x8xf32, #tpu.memory_space<vmem>>, %arg3: memref<8x8xf32, #tpu.memory_space<vmem>>, %arg4: memref<1x8xf32, #tpu.memory_space<vmem>>, %arg5: memref<8x8x8xf32, #tpu.memory_space<vmem>>) attributes {dimension_semantics = [#tpu.dimension_semantics<parallel>], iteration_bounds = array<i64: 2>, scalar_prefetch = 0 : i64, scratch_operands = 0 : i64, tpu.core_type = #tpu.core_type<tc>, window_params = [{transform_indices = @transform_0, window_bounds = array<i64: 8, 2, 8, 8>}, {pipeline_mode = #tpu.pipeline_mode<synchronous>, transform_indices = @transform_1, window_bounds = array<i64: 8, 8>}, {pipeline_mode = #tpu.pipeline_mode<synchronous>, transform_indices = @transform_2, window_bounds = array<i64: 8, 8>}, {pipeline_mode = #tpu.pipeline_mode<synchronous>, transform_indices = @transform_3, window_bounds = array<i64: 1, 8>}, {transform_indices = @transform_4, window_bounds = array<i64: 8, 8, 8>}]} {
    %c0 = arith.constant 0 : index
    %c0_0 = arith.constant 0 : index
    %c0_1 = arith.constant 0 : index
    %c0_2 = arith.constant 0 : index
    %0 = vector.load %arg1[%c0, %c0_0, %c0_1, %c0_2] : memref<8x2x8x8xf32, #tpu.memory_space<vmem>>, vector<8x2x8x8xf32>
    %1 = vector.extract_strided_slice %0 {offsets = [0, 0, 0, 0], sizes = [8, 1, 8, 8], strides = [1, 1, 1, 1]} : vector<8x2x8x8xf32> to vector<8x1x8x8xf32>
    %2 = vector.shape_cast %1 : vector<8x1x8x8xf32> to vector<8x8x8xf32>
    %3 = vector.shape_cast %2 : vector<8x8x8xf32> to vector<64x8xf32>
    %4 = vector.extract_strided_slice %0 {offsets = [0, 1, 0, 0], sizes = [8, 1, 8, 8], strides = [1, 1, 1, 1]} : vector<8x2x8x8xf32> to vector<8x1x8x8xf32>
    %5 = vector.shape_cast %4 : vector<8x1x8x8xf32> to vector<8x8x8xf32>
    %6 = vector.shape_cast %5 : vector<8x8x8xf32> to vector<64x8xf32>
    %cst = arith.constant dense<0.000000e+00> : vector<64xf32>
    %7 = vector.multi_reduction <add>, %3, %cst [1] : vector<64x8xf32> to vector<64xf32>
    %8 = vector.shape_cast %7 : vector<64xf32> to vector<64x1xf32>
    %cst_3 = arith.constant dense<0.000000e+00> : vector<64xf32>
    %9 = vector.multi_reduction <add>, %6, %cst_3 [1] : vector<64x8xf32> to vector<64xf32>
    %10 = vector.shape_cast %9 : vector<64xf32> to vector<64x1xf32>
    %11 = arith.addf %8, %10 : vector<64x1xf32>
    %12 = arith.mulf %3, %3 : vector<64x8xf32>
    %cst_4 = arith.constant dense<0.000000e+00> : vector<64xf32>
    %13 = vector.multi_reduction <add>, %12, %cst_4 [1] : vector<64x8xf32> to vector<64xf32>
    %14 = vector.shape_cast %13 : vector<64xf32> to vector<64x1xf32>
    %15 = arith.mulf %6, %6 : vector<64x8xf32>
    %cst_5 = arith.constant dense<0.000000e+00> : vector<64xf32>
    %16 = vector.multi_reduction <add>, %15, %cst_5 [1] : vector<64x8xf32> to vector<64xf32>
    %17 = vector.shape_cast %16 : vector<64xf32> to vector<64x1xf32>
    %18 = arith.addf %14, %17 : vector<64x1xf32>
    %cst_6 = arith.constant 6.250000e-02 : f32
    %19 = vector.broadcast %cst_6 : f32 to vector<64x1xf32>
    %20 = arith.mulf %11, %19 : vector<64x1xf32>
    %cst_7 = arith.constant 6.250000e-02 : f32
    %21 = vector.broadcast %cst_7 : f32 to vector<64x1xf32>
    %22 = arith.mulf %18, %21 : vector<64x1xf32>
    %23 = arith.mulf %20, %20 : vector<64x1xf32>
    %24 = arith.subf %22, %23 : vector<64x1xf32>
    %cst_8 = arith.constant 0.000000e+00 : f32
    %25 = vector.broadcast %cst_8 : f32 to vector<64x1xf32>
    %26 = arith.maximumf %24, %25 : vector<64x1xf32>
    %cst_9 = arith.constant 9.99999974E-6 : f32
    %27 = vector.broadcast %cst_9 : f32 to vector<64x1xf32>
    %28 = arith.addf %26, %27 : vector<64x1xf32>
    %29 = math.rsqrt %28 : vector<64x1xf32>
    %30 = vector.broadcast %20 : vector<64x1xf32> to vector<64x8xf32>
    %31 = arith.subf %3, %30 : vector<64x8xf32>
    %32 = vector.broadcast %29 : vector<64x1xf32> to vector<64x8xf32>
    %33 = arith.mulf %31, %32 : vector<64x8xf32>
    %34 = vector.broadcast %20 : vector<64x1xf32> to vector<64x8xf32>
    %35 = arith.subf %6, %34 : vector<64x8xf32>
    %36 = vector.broadcast %29 : vector<64x1xf32> to vector<64x8xf32>
    %37 = arith.mulf %35, %36 : vector<64x8xf32>
    %c0_10 = arith.constant 0 : index
    %c0_11 = arith.constant 0 : index
    %38 = vector.load %arg2[%c0_10, %c0_11] : memref<8x8xf32, #tpu.memory_space<vmem>>, vector<8x8xf32>
    %cst_12 = arith.constant dense<0.000000e+00> : vector<64x8xf32>
    %39 = tpu.matmul %33, %38, %cst_12 {dimension_numbers = #tpu.dot_dimension_numbers<[1], [0], [0], [1], [0, 0, 1, 1], [], []>} : vector<64x8xf32>, vector<8x8xf32>, vector<64x8xf32> -> vector<64x8xf32>
    %c0_13 = arith.constant 0 : index
    %c0_14 = arith.constant 0 : index
    %40 = vector.load %arg3[%c0_13, %c0_14] : memref<8x8xf32, #tpu.memory_space<vmem>>, vector<8x8xf32>
    %cst_15 = arith.constant dense<0.000000e+00> : vector<64x8xf32>
    %41 = tpu.matmul %37, %40, %cst_15 {dimension_numbers = #tpu.dot_dimension_numbers<[1], [0], [0], [1], [0, 0, 1, 1], [], []>} : vector<64x8xf32>, vector<8x8xf32>, vector<64x8xf32> -> vector<64x8xf32>
    %42 = arith.addf %39, %41 : vector<64x8xf32>
    %c0_16 = arith.constant 0 : index
    %c0_17 = arith.constant 0 : index
    %43 = vector.load %arg4[%c0_16, %c0_17] : memref<1x8xf32, #tpu.memory_space<vmem>>, vector<1x8xf32>
    %44 = vector.broadcast %43 : vector<1x8xf32> to vector<64x8xf32>
    %45 = arith.addf %42, %44 : vector<64x8xf32>
    %46 = vector.shape_cast %45 : vector<64x8xf32> to vector<8x8x8xf32>
    %c0_18 = arith.constant 0 : index
    %c0_19 = arith.constant 0 : index
    %c0_20 = arith.constant 0 : index
    %47 = vector.load %arg5[%c0_18, %c0_19, %c0_20] : memref<8x8x8xf32, #tpu.memory_space<vmem>>, vector<8x8x8xf32>
    tpu.vector_store %arg5[%c0_18, %c0_19, %c0_20], %46 {strides = array<i32>} : memref<8x8x8xf32, #tpu.memory_space<vmem>>, vector<8x8x8xf32>,
    return
  }
  func.func @transform_0(%arg0: i32) -> (i32, i32, i32, i32) {
    %c0_i32 = arith.constant 0 : i32
    %c0_i32_0 = arith.constant 0 : i32
    %c0_i32_1 = arith.constant 0 : i32
    %c0_i32_2 = arith.constant 0 : i32
    return %arg0, %c0_i32, %c0_i32_0, %c0_i32_1 : i32, i32, i32, i32
  }
  func.func @transform_1(%arg0: i32) -> (i32, i32) {
    %c0_i32 = arith.constant 0 : i32
    %c0_i32_0 = arith.constant 0 : i32
    %c0_i32_1 = arith.constant 0 : i32
    return %c0_i32, %c0_i32_0 : i32, i32
  }
  func.func @transform_2(%arg0: i32) -> (i32, i32) {
    %c0_i32 = arith.constant 0 : i32
    %c0_i32_0 = arith.constant 0 : i32
    %c0_i32_1 = arith.constant 0 : i32
    return %c0_i32, %c0_i32_0 : i32, i32
  }
  func.func @transform_3(%arg0: i32) -> (i32, i32) {
    %c0_i32 = arith.constant 0 : i32
    %c0_i32_0 = arith.constant 0 : i32
    %c0_i32_1 = arith.constant 0 : i32
    return %c0_i32, %c0_i32_0 : i32, i32
  }
  func.func @transform_4(%arg0: i32) -> (i32, i32, i32) {
    %c0_i32 = arith.constant 0 : i32
    %c0_i32_0 = arith.constant 0 : i32
    %c0_i32_1 = arith.constant 0 : i32
    return %arg0, %c0_i32, %c0_i32_0 : i32, i32, i32
  }
}

</mosaic_0001>

<bundles_post_ra>
// kernel: patch_merging.1
= control target key start
LH: loop header
LB: loop body
LE: loop exit
PB: predicated region body
PF: predicated region fallthrough
CT: control target
= control target key end

     0   :  { %s917_s15 = smov 0   ;;  %s1139_s0 = inlined_call_operand.vmem [shape: f32[16,2,8,8], index: 0, kind: input, shape index: {}]   ;;  %s1140_s1 = inlined_call_operand.vmem [shape: f32[8,8], index: 1, kind: input, shape index: {}]   ;;  %s1141_s2 = inlined_call_operand.vmem [shape: f32[8,8], index: 2, kind: input, shape index: {}]   ;;  %s1142_s3 = inlined_call_operand.vmem [shape: f32[1,8], index: 3, kind: input, shape index: {}]   ;;  %s1143_s4 = inlined_call_operand.vmem [shape: f32[16,8,8], index: 4, kind: output, shape index: {}]  }
   0x1 LB: > { %s776_s16 = sadd.s32 4294967295, %s890_s15   ;;  %p780_p0 = scmp.ge.s32.totalorder %s890_s15, 1  ;;  %s890_s15 = sphi %s917_s15, %s14_s15  }
   0x2   : > { %p164_p1 = scmp.lt.s32.totalorder %s890_s15, 3 }
   0x4   : > { %p165_p2 = pnand %p780_p0, %p164_p1 }
   0x5   : > { %s781_s17 = sshll.u32 (!%p165_p2), %s776_s16, 3  ;;  %vm220_vm0 = vcmask (!%p165_p2), 64512   ;;  %v438_v54 = vld [vmem:[%s1141_s2] sm:$0xff] (!%p165_p2) }
   0x6   : > { %168 = sbr.rel (%p165_p2) target bundleno = 461 (0x1cd), region = 36  ;;  %p192_p3 = scmp.lt.s32.totalorder (!%p165_p2), %s781_s17, 15  ;;  %v437_v55 = vld [vmem:[%s1140_s1] sm:$0xff] (!%p165_p2)  ;;  %824 = vmatprep.subr.mxu1 (!%p165_p2), %v438_v54 }
   0x7   : > { %838 = vmatprep.subr.mxu0 (!%p165_p2), %v437_v55  ;;  %825 = vmatpush3.msra.mxu1 (!%p165_p2), %v438_v54 }
   0x8   : > { %839 = vmatpush3.msra.mxu0 (!%p165_p2), %v437_v55 }
   0xd   : > { %s1145_s17 = smov (!%p192_p3, %s781_s17), 15 }
   0xe   : > { %s805_s18 = sshll.u32 %s1145_s17, 4  ;;  %s785_s26 = sshll.u32 %s1145_s17, 3 }
   0xf   : > { %s931_s21 = scalar_lea.vmem %s1139_s0, %s805_s18  ;;  %s1118_s5 = scalar_lea.vmem %s1143_s4, %s785_s26 }
  0x10   : > { %v934_v0 = vld [vmem:[%s931_s21 + $0x10] sm:$0xff]  ;;  %v937_v1 = vld [vmem:[%s931_s21] sm:$0xff]  ;;  %v940_v2 = vld [vmem:[%s931_s21 + $0x18] sm:$0xff] }
  0x11   : > { %v224_v3 = vsel %vm220_vm0, %v934_v0, 0.0  ;;  %v221_v4 = vsel %vm220_vm0, %v937_v1, 0.0  ;;  %v947_v5 = vld [vmem:[%s931_s21 + $0x8] sm:$0xff]  ;;  %v248_v6 = vsel %vm220_vm0, %v940_v2, 0.0  ;;  %v277_v9 = vmul.f32 %v937_v1, %v937_v1  ;;  %v969_v17 = vld [vmem:[%s931_s21 + $0x20] sm:$0xff]  ;;  %v976_v20 = vld [vmem:[%s931_s21 + $0x38] sm:$0xff] }
  0x12   : > { %225 = vadd.xlane.f32.xlu1 %v224_v3  ;;  %222 = vadd.xlane.f32.xlu0 %v221_v4  ;;  %v245_v7 = vsel %vm220_vm0, %v947_v5, 0.0  ;;  %v309_v8 = vmul.f32 %v947_v5, %v947_v5  ;;  %v310_v12 = vmul.f32 %v940_v2, %v940_v2  ;;  %v278_v13 = vmul.f32 %v934_v0, %v934_v0  ;;  %v966_v16 = vld [vmem:[%s931_s21 + $0x28] sm:$0xff]  ;;  %v979_v21 = vld [vmem:[%s931_s21 + $0x30] sm:$0xff]  ;;  %v1001_v33 = vld [vmem:[%s931_s21 + $0x40] sm:$0xff] }
  0x13   : > { %v285_v11 = vsel %vm220_vm0, %v277_v9, 0.0  ;;  %v251_v18 = vsel %vm220_vm0, %v966_v16, 0.0  ;;  %v227_v19 = vsel %vm220_vm0, %v969_v17, 0.0  ;;  %v254_v22 = vsel %vm220_vm0, %v976_v20, 0.0  ;;  %v998_v32 = vld [vmem:[%s931_s21 + $0x48] sm:$0xff]  ;;  %v1008_v36 = vld [vmem:[%s931_s21 + $0x58] sm:$0xff] }
  0x14   : > { %v317_v10 = vsel %vm220_vm0, %v309_v8, 0.0  ;;  %v320_v14 = vsel %vm220_vm0, %v310_v12, 0.0  ;;  %v288_v15 = vsel %vm220_vm0, %v278_v13, 0.0  ;;  %v230_v23 = vsel %vm220_vm0, %v979_v21, 0.0  ;;  %v1011_v37 = vld [vmem:[%s931_s21 + $0x50] sm:$0xff]  ;;  %v1030_v48 = vld [vmem:[%s931_s21 + $0x68] sm:$0xff] }
  0x15   : > { %v311_v24 = vmul.f32 %v966_v16, %v966_v16  ;;  %v279_v25 = vmul.f32 %v969_v17, %v969_v17  ;;  %v312_v28 = vmul.f32 %v976_v20, %v976_v20  ;;  %v280_v29 = vmul.f32 %v979_v21, %v979_v21  ;;  %v1033_v49 = vld [vmem:[%s931_s21 + $0x60] sm:$0xff]  ;;  %v1040_v52 = vld [vmem:[%s931_s21 + $0x78] sm:$0xff]  ;;  %v1043_v53 = vld [vmem:[%s931_s21 + $0x70] sm:$0xff] }
  0x16   : > { %249 = vadd.xlane.f32.xlu1 %v248_v6  ;;  %246 = vadd.xlane.f32.xlu0 %v245_v7  ;;  %v257_v34 = vsel %vm220_vm0, %v998_v32, 0.0  ;;  %v233_v35 = vsel %vm220_vm0, %v1001_v33, 0.0  ;;  %v260_v38 = vsel %vm220_vm0, %v1008_v36, 0.0  ;;  %v236_v39 = vsel %vm220_vm0, %v1011_v37, 0.0 }
  0x17   : > { %v323_v26 = vsel %vm220_vm0, %v311_v24, 0.0  ;;  %v291_v27 = vsel %vm220_vm0, %v279_v25, 0.0  ;;  %v326_v30 = vsel %vm220_vm0, %v312_v28, 0.0  ;;  %v294_v31 = vsel %vm220_vm0, %v280_v29, 0.0 }
  0x18   : > { %v313_v40 = vmul.f32 %v998_v32, %v998_v32  ;;  %v281_v41 = vmul.f32 %v1001_v33, %v1001_v33  ;;  %v314_v44 = vmul.f32 %v1008_v36, %v1008_v36  ;;  %v282_v45 = vmul.f32 %v1011_v37, %v1011_v37 }
  0x19   : > { %v263_v50 = vsel %vm220_vm0, %v1030_v48, 0.0  ;;  %v239_v51 = vsel %vm220_vm0, %v1033_v49, 0.0  ;;  %v266_v56 = vsel %vm220_vm0, %v1040_v52, 0.0  ;;  %v242_v57 = vsel %vm220_vm0, %v1043_v53, 0.0 }
  0x1a   : > { %318 = vadd.xlane.f32.xlu1 %v317_v10  ;;  %286 = vadd.xlane.f32.xlu0 %v285_v11  ;;  %v329_v42 = vsel %vm220_vm0, %v313_v40, 0.0  ;;  %v297_v43 = vsel %vm220_vm0, %v281_v41, 0.0  ;;  %v332_v46 = vsel %vm220_vm0, %v314_v44, 0.0  ;;  %v300_v47 = vsel %vm220_vm0, %v282_v45, 0.0 }
  0x1b   : > { %v315_v58 = vmul.f32 %v1030_v48, %v1030_v48  ;;  %v283_v59 = vmul.f32 %v1033_v49, %v1033_v49  ;;  %v316_v62 = vmul.f32 %v1040_v52, %v1040_v52  ;;  %v284_v63 = vmul.f32 %v1043_v53, %v1043_v53 }
  0x1d   : > { %v335_v60 = vsel %vm220_vm0, %v315_v58, 0.0  ;;  %v303_v61 = vsel %vm220_vm0, %v283_v59, 0.0  ;;  %v338_v3 = vsel %vm220_vm0, %v316_v62, 0.0  ;;  %v306_v4 = vsel %vm220_vm0, %v284_v63, 0.0 }
  0x1e   : > { %321 = vadd.xlane.f32.xlu1 %v320_v14  ;;  %289 = vadd.xlane.f32.xlu0 %v288_v15 }
  0x22   : > { %252 = vadd.xlane.f32.xlu1 %v251_v18  ;;  %228 = vadd.xlane.f32.xlu0 %v227_v19 }
  0x26   : > { %255 = vadd.xlane.f32.xlu1 %v254_v22  ;;  %231 = vadd.xlane.f32.xlu0 %v230_v23 }
  0x2a   : > { %324 = vadd.xlane.f32.xlu1 %v323_v26  ;;  %292 = vadd.xlane.f32.xlu0 %v291_v27 }
  0x2e   : > { %327 = vadd.xlane.f32.xlu1 %v326_v30  ;;  %295 = vadd.xlane.f32.xlu0 %v294_v31 }
  0x32   : > { %258 = vadd.xlane.f32.xlu1 %v257_v34  ;;  %234 = vadd.xlane.f32.xlu0 %v233_v35 }
  0x36   : > { %261 = vadd.xlane.f32.xlu1 %v260_v38  ;;  %237 = vadd.xlane.f32.xlu0 %v236_v39 }
  0x3a   : > { %330 = vadd.xlane.f32.xlu1 %v329_v42  ;;  %298 = vadd.xlane.f32.xlu0 %v297_v43 }
  0x3e   : > { %333 = vadd.xlane.f32.xlu1 %v332_v46  ;;  %301 = vadd.xlane.f32.xlu0 %v300_v47 }
  0x42   : > { %264 = vadd.xlane.f32.xlu1 %v263_v50  ;;  %240 = vadd.xlane.f32.xlu0 %v239_v51 }
  0x46   : > { %267 = vadd.xlane.f32.xlu1 %v266_v56  ;;  %243 = vadd.xlane.f32.xlu0 %v242_v57 }
  0x4a   : > { %336 = vadd.xlane.f32.xlu1 %v335_v60  ;;  %304 = vadd.xlane.f32.xlu0 %v303_v61 }
  0x4e   : > { %339 = vadd.xlane.f32.xlu1 %v338_v3  ;;  %307 = vadd.xlane.f32.xlu0 %v306_v4 }
  0x9f   : > { %v226_v6 = vpop.xlane.xlu1 %225  ;;  %v223_v7 = vpop.xlane.xlu0 %222 }
  0xa3   : > { %v250_v8 = vpop.xlane.xlu1 %249  ;;  %v247_v9 = vpop.xlane.xlu0 %246 }
  0xa4   : > { %v269_v10 = vadd.f32 %v247_v9, %v223_v7  ;;  %v270_v11 = vadd.f32 %v250_v8, %v226_v6 }
  0xa6   : > { %v349_v12 = vmul.f32 0.0625, %v269_v10  ;;  %v350_v18 = vmul.f32 0.0625, %v270_v11 }
  0xa7   : > { %v319_v13 = vpop.xlane.xlu1 %318  ;;  %v287_v14 = vpop.xlane.xlu0 %286 }
  0xa8   : > { %v341_v15 = vadd.f32 %v319_v13, %v287_v14  ;;  %v365_v19 = vmul.f32 %v349_v12, %v349_v12  ;;  %v366_v28 = vmul.f32 %v350_v18, %v350_v18  ;;  %v421_v57 = vsub.f32 %v947_v5, %v349_v12 }
  0xa9   : > { %v405_v58 = vsub.f32 %v937_v1, %v349_v12  ;;  %v406_v7 = vsub.f32 %v934_v0, %v350_v18  ;;  %v422_v8 = vsub.f32 %v940_v2, %v350_v18 }
  0xaa   : > { %v357_v22 = vmul.f32 0.0625, %v341_v15 }
  0xab   : > { %v322_v23 = vpop.xlane.xlu1 %321  ;;  %v290_v24 = vpop.xlane.xlu0 %289 }
  0xac   : > { %v373_v25 = vsub.f32 %v357_v22, %v365_v19  ;;  %v342_v26 = vadd.f32 %v322_v23, %v290_v24 }
  0xae   : > { %v381_v27 = vmax.f32 %v373_v25, 0.0  ;;  %v358_v29 = vmul.f32 0.0625, %v342_v26 }
  0xaf   : > { %v253_v30 = vpop.xlane.xlu1 %252  ;;  %v229_v31 = vpop.xlane.xlu0 %228 }
  0xb0   : > { %v389_v34 = vadd.f32 1e-05, %v381_v27  ;;  %v374_v35 = vsub.f32 %v358_v29, %v366_v28  ;;  %v271_v39 = vadd.f32 %v253_v30, %v229_v31 }
  0xb2   : > { %868 = vrsqrt.f32 %v389_v34  ;;  %v382_v38 = vmax.f32 %v374_v35, 0.0  ;;  %v351_v43 = vmul.f32 0.0625, %v271_v39 }
  0xb3   : > { %v256_v40 = vpop.xlane.xlu1 %255  ;;  %v232_v41 = vpop.xlane.xlu0 %231 }
  0xb4   : > { %v390_v42 = vadd.f32 1e-05, %v382_v38  ;;  %v272_v44 = vadd.f32 %v256_v40, %v232_v41  ;;  %v367_v51 = vmul.f32 %v351_v43, %v351_v43  ;;  %v407_v29 = vsub.f32 %v969_v17, %v351_v43 }
  0xb5   : > { %v423_v30 = vsub.f32 %v966_v16, %v351_v43 }
  0xb6   : > { %870 = vrsqrt.f32 %v390_v42  ;;  %v1067_v50 = vmul.f32 0.0625, %v272_v44 }
  0xb7   : > { %v325_v45 = vpop.xlane.xlu1 %324  ;;  %v293_v46 = vpop.xlane.xlu0 %292 }
  0xb8   : > { %v343_v47 = vadd.f32 %v325_v45, %v293_v46  ;;  %v368_v4 = vmul.f32 %v1067_v50, %v1067_v50  ;;  %v408_v46 = vsub.f32 %v979_v21, %v1067_v50  ;;  %v424_v17 = vsub.f32 %v976_v20, %v1067_v50 }
  0xba   : > { %v359_v54 = vmul.f32 0.0625, %v343_v47 }
  0xbb   : > { %v328_v55 = vpop.xlane.xlu1 %327  ;;  %v296_v56 = vpop.xlane.xlu0 %295 }
  0xbc   : > { %v869_v59 = vpop.eup %868  ;;  %v375_v60 = vsub.f32 %v359_v54, %v367_v51  ;;  %v344_v61 = vadd.f32 %v328_v55, %v296_v56 }
  0xbd   : > { %v429_v62 = vmul.f32 %v869_v59, %v421_v57  ;;  %v413_v63 = vmul.f32 %v869_v59, %v405_v58 }
  0xbe   : > { %v383_v3 = vmax.f32 %v375_v60, 0.0  ;;  %v360_v6 = vmul.f32 0.0625, %v344_v61 }
  0xbf   : > { %v259_v9 = vpop.xlane.xlu1 %258  ;;  %826 = vmatprep.mubr.msk.f32.mxu1 %vm220_vm0, %v429_v62  ;;  %840 = vmatprep.mubr.msk.f32.mxu0 %vm220_vm0, %v413_v63  ;;  %v235_v1 = vpop.xlane.xlu0 %234 }
  0xc0   : > { %v871_v5 = vpop.eup %870  ;;  %v391_v10 = vadd.f32 1e-05, %v383_v3  ;;  %v376_v11 = vsub.f32 %v360_v6, %v368_v4  ;;  %v273_v15 = vadd.f32 %v259_v9, %v235_v1 }
  0xc1   : > { %v430_v12 = vmul.f32 %v871_v5, %v422_v8  ;;  %v414_v13 = vmul.f32 %v871_v5, %v406_v7 }
  0xc2   : > { %872 = vrsqrt.f32 %v391_v10  ;;  %v384_v14 = vmax.f32 %v376_v11, 0.0  ;;  %v353_v18 = vmul.f32 0.0625, %v273_v15 }
  0xc3   : > { %v262_v19 = vpop.xlane.xlu1 %261  ;;  %827 = vmatmul.mubr.msk.f32.vlgmr.msra.gmra.mrb[0].mxu1 %vm220_vm0, %v430_v12  ;;  %841 = vmatmul.mubr.msk.f32.vlgmr.msra.gmra.mrb[0].mxu0 %vm220_vm0, %v414_v13  ;;  %v238_v0 = vpop.xlane.xlu0 %237 }
  0xc4   : > { %v392_v2 = vadd.f32 1e-05, %v384_v14  ;;  %v274_v22 = vadd.f32 %v262_v19, %v238_v0  ;;  %v369_v27 = vmul.f32 %v353_v18, %v353_v18  ;;  %v409_v7 = vsub.f32 %v1001_v33, %v353_v18 }
  0xc5   : > { %v425_v8 = vsub.f32 %v998_v32, %v353_v18 }
  0xc6   : > { %874 = vrsqrt.f32 %v392_v2  ;;  %v1079_v26 = vmul.f32 0.0625, %v274_v22 }
  0xc7   : > { %v331_v23 = vpop.xlane.xlu1 %330  ;;  %v299_v24 = vpop.xlane.xlu0 %298 }
  0xc8   : > { %v345_v25 = vadd.f32 %v331_v23, %v299_v24  ;;  %v370_v44 = vmul.f32 %v1079_v26, %v1079_v26  ;;  %v410_v0 = vsub.f32 %v1011_v37, %v1079_v26  ;;  %v426_v2 = vsub.f32 %v1008_v36, %v1079_v26 }
  0xca   : > { %v361_v28 = vmul.f32 0.0625, %v345_v25 }
  0xcb   : > { %v334_v31 = vpop.xlane.xlu1 %333  ;;  %v302_v34 = vpop.xlane.xlu0 %301 }
  0xcc   : > { %v873_v35 = vpop.eup %872  ;;  %v377_v38 = vsub.f32 %v361_v28, %v369_v27  ;;  %v346_v39 = vadd.f32 %v334_v31, %v302_v34 }
  0xcd   : > { %v431_v40 = vmul.f32 %v873_v35, %v423_v30  ;;  %v415_v41 = vmul.f32 %v873_v35, %v407_v29 }
  0xce   : > { %v385_v42 = vmax.f32 %v377_v38, 0.0  ;;  %v362_v45 = vmul.f32 0.0625, %v346_v39 }
  0xcf   : > { %v265_v47 = vpop.xlane.xlu1 %264  ;;  %829 = vmatprep.mubr.msk.f32.mxu1 %vm220_vm0, %v431_v40  ;;  %843 = vmatprep.mubr.msk.f32.mxu0 %vm220_vm0, %v415_v41  ;;  %v241_v16 = vpop.xlane.xlu0 %240 }
  0xd0   : > { %v875_v43 = vpop.eup %874  ;;  %v393_v51 = vadd.f32 1e-05, %v385_v42  ;;  %v378_v54 = vsub.f32 %v362_v45, %v370_v44  ;;  %v275_v58 = vadd.f32 %v265_v47, %v241_v16 }
  0xd1   : > { %v432_v55 = vmul.f32 %v875_v43, %v424_v17  ;;  %v416_v56 = vmul.f32 %v875_v43, %v408_v46 }
  0xd2   : > { %876 = vrsqrt.f32 %v393_v51  ;;  %v386_v57 = vmax.f32 %v378_v54, 0.0  ;;  %v355_v50 = vmul.f32 0.0625, %v275_v58 }
  0xd3   : > { %v268_v59 = vpop.xlane.xlu1 %267  ;;  %830 = vmatmul.mubr.msk.f32.gmra.mrb[2].mxu1 %vm220_vm0, %v432_v55  ;;  %844 = vmatmul.mubr.msk.f32.gmra.mrb[2].mxu0 %vm220_vm0, %v416_v56  ;;  %v244_v20 = vpop.xlane.xlu0 %243 }
  0xd4   : > { %v394_v21 = vadd.f32 1e-05, %v386_v57  ;;  %v276_v60 = vadd.f32 %v268_v59, %v244_v20  ;;  %v371_v4 = vmul.f32 %v355_v50, %v355_v50  ;;  %v411_v36 = vsub.f32 %v1033_v49, %v355_v50 }
  0xd5   : > { %v427_v37 = vsub.f32 %v1030_v48, %v355_v50 }
  0xd6   : > { %878 = vrsqrt.f32 %v394_v21  ;;  %v356_v3 = vmul.f32 0.0625, %v276_v60 }
  0xd7   : > { %v337_v61 = vpop.xlane.xlu1 %336  ;;  %v305_v62 = vpop.xlane.xlu0 %304 }
  0xd8   : > { %v347_v63 = vadd.f32 %v337_v61, %v305_v62  ;;  %v372_v15 = vmul.f32 %v356_v3, %v356_v3  ;;  %v412_v29 = vsub.f32 %v1043_v53, %v356_v3  ;;  %v428_v30 = vsub.f32 %v1040_v52, %v356_v3  ;;  %v802_v53 = vld [vmem:[%s1142_s3] ss:$0 sm:$0xff] }
  0xda   : > { %v363_v6 = vmul.f32 0.0625, %v347_v63 }
  0xdb   : > { %v340_v9 = vpop.xlane.xlu1 %339  ;;  %v308_v1 = vpop.xlane.xlu0 %307 }
  0xdc   : > { %v877_v5 = vpop.eup %876  ;;  %v379_v10 = vsub.f32 %v363_v6, %v371_v4  ;;  %v348_v11 = vadd.f32 %v340_v9, %v308_v1 }
  0xdd   : > { %v433_v12 = vmul.f32 %v877_v5, %v425_v8  ;;  %v417_v13 = vmul.f32 %v877_v5, %v409_v7 }
  0xde   : > { %v387_v14 = vmax.f32 %v379_v10, 0.0  ;;  %v364_v19 = vmul.f32 0.0625, %v348_v11 }
  0xdf   : > { %832 = vmatprep.mubr.msk.f32.mxu1 %vm220_vm0, %v433_v12  ;;  %846 = vmatprep.mubr.msk.f32.mxu0 %vm220_vm0, %v417_v13 }
  0xe0   : > { %v879_v32 = vpop.eup %878  ;;  %v395_v33 = vadd.f32 1e-05, %v387_v14  ;;  %v380_v18 = vsub.f32 %v364_v19, %v372_v15 }
  0xe1   : > { %v434_v22 = vmul.f32 %v879_v32, %v426_v2  ;;  %v418_v23 = vmul.f32 %v879_v32, %v410_v0 }
  0xe2   : > { %880 = vrsqrt.f32 %v395_v33  ;;  %v388_v24 = vmax.f32 %v380_v18, 0.0 }
  0xe3   : > { %833 = vmatmul.mubr.msk.f32.gmra.mrb[4].mxu1 %vm220_vm0, %v434_v22  ;;  %847 = vmatmul.mubr.msk.f32.gmra.mrb[4].mxu0 %vm220_vm0, %v418_v23 }
  0xe4   : > { %v396_v25 = vadd.f32 1e-05, %v388_v24 }
  0xe6   : > { %882 = vrsqrt.f32 %v396_v25 }
  0xec   : > { %v881_v26 = vpop.eup %880 }
  0xed   : > { %v435_v27 = vmul.f32 %v881_v26, %v427_v37  ;;  %v419_v28 = vmul.f32 %v881_v26, %v411_v36 }
  0xef   : > { %835 = vmatprep.mubr.msk.f32.mxu1 %vm220_vm0, %v435_v27  ;;  %849 = vmatprep.mubr.msk.f32.mxu0 %vm220_vm0, %v419_v28 }
  0xf0   : > { %v883_v31 = vpop.eup %882 }
  0xf1   : > { %v436_v34 = vmul.f32 %v883_v31, %v428_v30  ;;  %v420_v35 = vmul.f32 %v883_v31, %v412_v29 }
  0xf3   : > { %836 = vmatmul.mubr.msk.f32.gmra.mrb[6].mxu1 %vm220_vm0, %v436_v34  ;;  %850 = vmatmul.mubr.msk.f32.gmra.mrb[6].mxu0 %vm220_vm0, %v420_v35 }
 0x196   : > { %v828_v48 = vpop.f32.mrb[0].mxu1  ;;  %v842_v49 = vpop.f32.mrb[0].mxu0 }
 0x197   : > { %v664_v38 = vadd.f32 %v842_v49, %v828_v48  ;;  %v529_v52 = vpop.f32.mrb[1].mxu1  ;;  %v658_v39 = vpop.f32.mrb[1].mxu0 }
 0x198   : > { %v659_v40 = vadd.f32 %v658_v39, %v529_v52 }
 0x199   : > { %v705_v41 = vadd.f32 %v802_v53, %v664_v38 }
 0x19a   : > { %v704_v42 = vadd.f32 %v802_v53, %v659_v40 }
 0x19b   : > { %713 = vst.msk [vmem:[%s1118_s5 + $0x8] sm:$0xff] %vm220_vm0, %v705_v41 }
 0x19c   : > { %712 = vst.msk [vmem:[%s1118_s5] sm:$0xff] %vm220_vm0, %v704_v42 }
 0x1a6   : > { %v831_v44 = vpop.f32.mrb[2].mxu1  ;;  %v845_v45 = vpop.f32.mrb[2].mxu0 }
 0x1a7   : > { %v674_v46 = vadd.f32 %v845_v45, %v831_v44  ;;  %v539_v17 = vpop.f32.mrb[3].mxu1  ;;  %v668_v47 = vpop.f32.mrb[3].mxu0 }
 0x1a8   : > { %v669_v16 = vadd.f32 %v668_v47, %v539_v17 }
 0x1a9   : > { %v707_v43 = vadd.f32 %v802_v53, %v674_v46 }
 0x1aa   : > { %v706_v51 = vadd.f32 %v802_v53, %v669_v16 }
 0x1ab   : > { %715 = vst.msk [vmem:[%s1118_s5 + $0x18] sm:$0xff] %vm220_vm0, %v707_v43 }
 0x1ac   : > { %714 = vst.msk [vmem:[%s1118_s5 + $0x10] sm:$0xff] %vm220_vm0, %v706_v51 }
 0x1b6   : > { %v834_v54 = vpop.f32.mrb[4].mxu1  ;;  %v848_v55 = vpop.f32.mrb[4].mxu0 }
 0x1b7   : > { %v684_v56 = vadd.f32 %v848_v55, %v834_v54  ;;  %v549_v57 = vpop.f32.mrb[5].mxu1  ;;  %v678_v58 = vpop.f32.mrb[5].mxu0 }
 0x1b8   : > { %v679_v59 = vadd.f32 %v678_v58, %v549_v57 }
 0x1b9   : > { %v709_v20 = vadd.f32 %v802_v53, %v684_v56 }
 0x1ba   : > { %v708_v21 = vadd.f32 %v802_v53, %v679_v59 }
 0x1bb   : > { %717 = vst.msk [vmem:[%s1118_s5 + $0x28] sm:$0xff] %vm220_vm0, %v709_v20 }
 0x1bc   : > { %716 = vst.msk [vmem:[%s1118_s5 + $0x20] sm:$0xff] %vm220_vm0, %v708_v21 }
 0x1c6   : > { %v837_v50 = vpop.f32.mrb[6].mxu1  ;;  %v851_v60 = vpop.f32.mrb[6].mxu0 }
 0x1c7   : > { %v694_v61 = vadd.f32 %v851_v60, %v837_v50  ;;  %v559_v62 = vpop.f32.mrb[7].mxu1  ;;  %v688_v63 = vpop.f32.mrb[7].mxu0 }
 0x1c8   : > { %v689_v3 = vadd.f32 %v688_v63, %v559_v62 }
 0x1c9   : > { %v711_v4 = vadd.f32 %v802_v53, %v694_v61 }
 0x1ca   : > { %v710_v6 = vadd.f32 %v802_v53, %v689_v3 }
 0x1cb   : > { %719 = vst.msk [vmem:[%s1118_s5 + $0x38] sm:$0xff] %vm220_vm0, %v711_v4 }
 0x1cc   : > { %718 = vst.msk [vmem:[%s1118_s5 + $0x30] sm:$0xff] %vm220_vm0, %v710_v6 }
 0x1cd PF: > { %s14_s15 = sadd.s32 1, %s890_s15  }
 0x1ce   : > { %p11_p4 = scmp.ge.s32.totalorder %s14_s15, 4  }
 0x1d0   :  { %13 = sbr.rel (!%p11_p4) target bundleno = 1 (0x1), region = 66 }

</bundles_post_ra>
